<compile_context>
chip_gen: v6e
topology: v6e:2x2x1
jax: 0.10.0
libtpu: 0.0.40
codegen_flags: <defaults>
</compile_context>

<pallas_src>
import jax
import jax.numpy as jnp
from jax import lax
from jax.experimental import pallas as pl
from jax.experimental.pallas import tpu as pltpu

_SMOOTH = 1000.0
_TR_MAX = 2048   # rows per tile: 2048*128*4B = 1 MiB per f32 input tile
_NSPLIT = 2      # split the reduction range across 2 halves (v7x: 2 TensorCores)


def _dice_partial_sums(pred_r, label_r):
    """pred_r, label_r: (B, rows, 128). Returns per-sample f32 (s_i, s_p + s_l)."""
    B, rows, _ = pred_r.shape

    # Fixed large tile; fall back to a full-extent block for small inputs.
    tr = _TR_MAX if rows >= _TR_MAX else rows
    k_total = pl.cdiv(rows, tr)            # logical row-blocks per sample
    k_half = pl.cdiv(k_total, _NSPLIT)     # k-steps per half
    # Masking is needed whenever some (half, k) tile covers rows beyond `rows`
    # (ragged last tile and/or an empty tile in the second half).
    need_mask = (_NSPLIT * k_half * tr) != rows
    aligned = (tr % 8) == 0                # sublane-aligned -> VPU-only reshape trick

    def kernel(pred_ref, label_ref, out_i_ref, out_pl_ref, acc_i, acc_pl):
        h = pl.program_id(1)
        k = pl.program_id(2)
        nk = pl.num_programs(2)

        @pl.when(k == 0)
        def _():
            acc_i[...] = jnp.zeros_like(acc_i)
            acc_pl[...] = jnp.zeros_like(acc_pl)

        p = pred_ref[0].astype(jnp.float32)     # (tr, 128)
        l = label_ref[0].astype(jnp.float32)    # (tr, 128)

        if need_mask:
            # Rows at/after `rows` hold unspecified data -> zero them (neutral
            # for all three sums). Fully-empty tiles get valid <= 0.
            row_start = (h * k_half + k) * tr
            valid = rows - row_start
            row_ids = lax.broadcasted_iota(jnp.int32, (tr, 128), 0)
            m = row_ids < valid
            p = jnp.where(m, p, 0.0)
            l = jnp.where(m, l, 0.0)

        if aligned:
            # Fold the sublane axis vreg-by-vreg: pure VPU adds per tile; the
            # cross-lane/sublane reduce runs once per (sample, half).
            p3 = p.reshape(tr // 8, 8, 128)
            l3 = l.reshape(tr // 8, 8, 128)
            acc_i[...] += jnp.sum(p3 * l3, axis=0)
            acc_pl[...] += jnp.sum(p3 + l3, axis=0)

            @pl.when(k == nk - 1)
            def _():
                out_i_ref[...] = jnp.broadcast_to(
                    jnp.sum(acc_i[...]), out_i_ref.shape)
                out_pl_ref[...] = jnp.broadcast_to(
                    jnp.sum(acc_pl[...]), out_pl_ref.shape)
        else:
            # tr == rows (full-extent block, single k-step per half): reduce the
            # tile directly without the sublane-fold reshape.
            out_i_ref[...] = jnp.broadcast_to(jnp.sum(p * l), out_i_ref.shape)
            out_pl_ref[...] = jnp.broadcast_to(
                jnp.sum(p) + jnp.sum(l), out_pl_ref.shape)

    def in_map(b, h, k):
        # Clamp so fully-empty tiles re-read the last valid block (masked to 0).
        return (b, jnp.minimum(h * k_half + k, k_total - 1), 0)

    out_i, out_pl = pl.pallas_call(
        kernel,
        out_shape=(
            jax.ShapeDtypeStruct((B, _NSPLIT, 8, 128), jnp.float32),
            jax.ShapeDtypeStruct((B, _NSPLIT, 8, 128), jnp.float32),
        ),
        grid_spec=pltpu.PrefetchScalarGridSpec(
            num_scalar_prefetch=0,
            grid=(B, _NSPLIT, k_half),
            in_specs=[
                pl.BlockSpec((1, tr, 128), in_map),
                pl.BlockSpec((1, tr, 128), in_map),
            ],
            out_specs=[
                pl.BlockSpec((1, 1, 8, 128), lambda b, h, k: (b, h, 0, 0)),
                pl.BlockSpec((1, 1, 8, 128), lambda b, h, k: (b, h, 0, 0)),
            ],
            scratch_shapes=[
                pltpu.VMEM((8, 128), jnp.float32),
                pltpu.VMEM((8, 128), jnp.float32),
            ],
        ),
        compiler_params=pltpu.CompilerParams(
            dimension_semantics=("parallel", "parallel", "arbitrary")),
    )(pred_r, label_r)

    s_i = jnp.sum(out_i[:, :, 0, 0], axis=1)     # (B,)
    s_pl = jnp.sum(out_pl[:, :, 0, 0], axis=1)   # (B,)
    return s_i, s_pl


def dice_loss(preds, labels):
    """preds, labels: (B, ...) arrays (any float/int dtype). Scalar f32 loss."""
    B = preds.shape[0]
    preds_f = preds.reshape(B, -1)
    labels_f = labels.reshape(B, -1)
    N = preds_f.shape[1]

    n_main = (N // 128) * 128
    rows = n_main // 128

    if rows > 0:
        if n_main == N:
            pred_main, label_main = preds_f, labels_f          # free reshape below
        else:
            pred_main = preds_f[:, :n_main]
            label_main = labels_f[:, :n_main]
        s_i, s_pl = _dice_partial_sums(
            pred_main.reshape(B, rows, 128), label_main.reshape(B, rows, 128))
    else:
        s_i = jnp.zeros((B,), jnp.float32)
        s_pl = jnp.zeros((B,), jnp.float32)

    if n_main != N:
        # TODO(synk): < 128-element per-sample tail; summed in plain JAX so the
        # kernel never needs a padded (copied) HBM input.
        pt = preds_f[:, n_main:].astype(jnp.float32)
        lt = labels_f[:, n_main:].astype(jnp.float32)
        s_i = s_i + jnp.sum(pt * lt, axis=1)
        s_pl = s_pl + jnp.sum(pt, axis=1) + jnp.sum(lt, axis=1)

    dice = (2.0 * s_i + _SMOOTH) / (s_pl + _SMOOTH)
    return (1.0 - jnp.sum(dice) / B).astype(jnp.float32)


def _dice_ref(preds, labels):
    """Pure-JAX reference mirroring the PyTorch Dice_loss module."""
    B = preds.shape[0]
    p = preds.reshape(B, -1).astype(jnp.float32)
    lab = labels.reshape(B, -1).astype(jnp.float32)
    inter = jnp.sum(p * lab, axis=1)
    dice = (2.0 * inter + _SMOOTH) / (jnp.sum(p, axis=1) + jnp.sum(lab, axis=1) + _SMOOTH)
    return 1.0 - jnp.sum(dice) / B


if __name__ == "__main__":
    key = jax.random.PRNGKey(0)
    k1, k2 = jax.random.split(key)

    B, C, H, W = 2, 4, 16, 16
    # preds in (0,1) via sigmoid; labels are a binary mask.
    preds = jax.nn.sigmoid(jax.random.normal(k1, (B, C, H, W), dtype=jnp.float32))
    labels = (jax.random.uniform(k2, (B, C, H, W)) > 0.5).astype(jnp.float32)

    loss = jax.block_until_ready(dice_loss(preds, labels))
    ref = jax.block_until_ready(_dice_ref(preds, labels))

    assert jnp.allclose(loss, ref, rtol=1e-5, atol=1e-6), (loss, ref)
    print("KERNEL_OK")
</pallas_src>

<mosaic_0001>
module attributes {stable_mosaic.version = 11 : i64} {
  func.func @kernel(%arg0: i32, %arg1: i32, %arg2: i32, %arg3: memref<1x8x128xf32, #tpu.memory_space<vmem>>, %arg4: memref<1x8x128xf32, #tpu.memory_space<vmem>>, %arg5: memref<1x1x8x128xf32, #tpu.memory_space<vmem>>, %arg6: memref<1x1x8x128xf32, #tpu.memory_space<vmem>>, %arg7: memref<8x128xf32, #tpu.memory_space<vmem>>, %arg8: memref<8x128xf32, #tpu.memory_space<vmem>>) attributes {dimension_semantics = [#tpu.dimension_semantics<parallel>, #tpu.dimension_semantics<parallel>, #tpu.dimension_semantics<arbitrary>], iteration_bounds = array<i64: 2, 2, 1>, scalar_prefetch = 0 : i64, scratch_operands = 2 : i64, tpu.core_type = #tpu.core_type<tc>, window_params = [{transform_indices = @transform_0, window_bounds = array<i64: 1, 8, 128>}, {transform_indices = @transform_1, window_bounds = array<i64: 1, 8, 128>}, {transform_indices = @transform_2, window_bounds = array<i64: 1, 1, 8, 128>}, {transform_indices = @transform_3, window_bounds = array<i64: 1, 1, 8, 128>}]} {
    %c0_i32 = arith.constant 0 : i32
    %0 = arith.cmpi eq, %arg2, %c0_i32 : i32
    %1 = arith.extui %0 : i1 to i32
    %c0_i32_0 = arith.constant 0 : i32
    %2 = arith.cmpi ne, %1, %c0_i32_0 : i32
    scf.if %2 {
      %cst_20 = arith.constant 0.000000e+00 : f32
      %33 = vector.broadcast %cst_20 : f32 to vector<8x128xf32>
      %c0_21 = arith.constant 0 : index
      %c0_22 = arith.constant 0 : index
      %34 = vector.load %arg7[%c0_21, %c0_22] : memref<8x128xf32, #tpu.memory_space<vmem>>, vector<8x128xf32>
      tpu.vector_store %arg7[%c0_21, %c0_22], %33 {strides = array<i32>} : memref<8x128xf32, #tpu.memory_space<vmem>>, vector<8x128xf32>,
      %cst_23 = arith.constant 0.000000e+00 : f32
      %35 = vector.broadcast %cst_23 : f32 to vector<8x128xf32>
      %c0_24 = arith.constant 0 : index
      %c0_25 = arith.constant 0 : index
      %36 = vector.load %arg8[%c0_24, %c0_25] : memref<8x128xf32, #tpu.memory_space<vmem>>, vector<8x128xf32>
      tpu.vector_store %arg8[%c0_24, %c0_25], %35 {strides = array<i32>} : memref<8x128xf32, #tpu.memory_space<vmem>>, vector<8x128xf32>,
    } else {
    }
    %c0 = arith.constant 0 : index
    %c0_1 = arith.constant 0 : index
    %c0_2 = arith.constant 0 : index
    %3 = vector.load %arg3[%c0, %c0_1, %c0_2] : memref<1x8x128xf32, #tpu.memory_space<vmem>>, vector<1x8x128xf32>
    %4 = vector.shape_cast %3 : vector<1x8x128xf32> to vector<8x128xf32>
    %c0_3 = arith.constant 0 : index
    %c0_4 = arith.constant 0 : index
    %c0_5 = arith.constant 0 : index
    %5 = vector.load %arg4[%c0_3, %c0_4, %c0_5] : memref<1x8x128xf32, #tpu.memory_space<vmem>>, vector<1x8x128xf32>
    %6 = vector.shape_cast %5 : vector<1x8x128xf32> to vector<8x128xf32>
    %c1_i32 = arith.constant 1 : i32
    %7 = arith.muli %arg1, %c1_i32 : i32
    %8 = arith.addi %7, %arg2 : i32
    %c8_i32 = arith.constant 8 : i32
    %9 = arith.muli %8, %c8_i32 : i32
    %c8_i32_6 = arith.constant 8 : i32
    %10 = arith.subi %c8_i32_6, %9 : i32
    %11 = tpu.iota {dimensions = array<i32: 0>} : vector<8x128xi32>
    %12 = vector.broadcast %10 : i32 to vector<8x128xi32>
    %13 = arith.cmpi slt, %11, %12 : vector<8x128xi32>
    %cst = arith.constant 0.000000e+00 : f32
    %14 = vector.broadcast %cst : f32 to vector<8x128xf32>
    %15 = arith.select %13, %4, %14 : vector<8x128xi1>, vector<8x128xf32>
    %cst_7 = arith.constant 0.000000e+00 : f32
    %16 = vector.broadcast %cst_7 : f32 to vector<8x128xf32>
    %17 = arith.select %13, %6, %16 : vector<8x128xi1>, vector<8x128xf32>
    %18 = vector.shape_cast %15 : vector<8x128xf32> to vector<1x8x128xf32>
    %19 = vector.shape_cast %17 : vector<8x128xf32> to vector<1x8x128xf32>
    %c0_8 = arith.constant 0 : index
    %c0_9 = arith.constant 0 : index
    %20 = vector.load %arg7[%c0_8, %c0_9] : memref<8x128xf32, #tpu.memory_space<vmem>>, vector<8x128xf32>
    %21 = arith.mulf %18, %19 : vector<1x8x128xf32>
    %cst_10 = arith.constant dense<0.000000e+00> : vector<8x128xf32>
    %22 = vector.multi_reduction <add>, %21, %cst_10 [0] : vector<1x8x128xf32> to vector<8x128xf32>
    %23 = arith.addf %20, %22 : vector<8x128xf32>
    %c0_11 = arith.constant 0 : index
    %c0_12 = arith.constant 0 : index
    %24 = vector.load %arg7[%c0_11, %c0_12] : memref<8x128xf32, #tpu.memory_space<vmem>>, vector<8x128xf32>
    tpu.vector_store %arg7[%c0_11, %c0_12], %23 {strides = array<i32>} : memref<8x128xf32, #tpu.memory_space<vmem>>, vector<8x128xf32>,
    %c0_13 = arith.constant 0 : index
    %c0_14 = arith.constant 0 : index
    %25 = vector.load %arg8[%c0_13, %c0_14] : memref<8x128xf32, #tpu.memory_space<vmem>>, vector<8x128xf32>
    %26 = arith.addf %18, %19 : vector<1x8x128xf32>
    %cst_15 = arith.constant dense<0.000000e+00> : vector<8x128xf32>
    %27 = vector.multi_reduction <add>, %26, %cst_15 [0] : vector<1x8x128xf32> to vector<8x128xf32>
    %28 = arith.addf %25, %27 : vector<8x128xf32>
    %c0_16 = arith.constant 0 : index
    %c0_17 = arith.constant 0 : index
    %29 = vector.load %arg8[%c0_16, %c0_17] : memref<8x128xf32, #tpu.memory_space<vmem>>, vector<8x128xf32>
    tpu.vector_store %arg8[%c0_16, %c0_17], %28 {strides = array<i32>} : memref<8x128xf32, #tpu.memory_space<vmem>>, vector<8x128xf32>,
    %c0_i32_18 = arith.constant 0 : i32
    %30 = arith.cmpi eq, %arg2, %c0_i32_18 : i32
    %31 = arith.extui %30 : i1 to i32
    %c0_i32_19 = arith.constant 0 : i32
    %32 = arith.cmpi ne, %31, %c0_i32_19 : i32
    scf.if %32 {
      %c0_20 = arith.constant 0 : index
      %c0_21 = arith.constant 0 : index
      %33 = vector.load %arg7[%c0_20, %c0_21] : memref<8x128xf32, #tpu.memory_space<vmem>>, vector<8x128xf32>
      %34 = vector.shape_cast %33 : vector<8x128xf32> to vector<1x8x128xf32>
      %cst_22 = arith.constant dense<0.000000e+00> : vector<1xf32>
      %35 = vector.multi_reduction <add>, %34, %cst_22 [1, 2] : vector<1x8x128xf32> to vector<1xf32>
      %36 = vector.shape_cast %35 : vector<1xf32> to vector<1x1x1xf32>
      %37 = vector.extract %36[0, 0, 0] : f32 from vector<1x1x1xf32>
      %38 = vector.broadcast %37 : f32 to vector<1x1x8x128xf32>
      %c0_23 = arith.constant 0 : index
      %c0_24 = arith.constant 0 : index
      %c0_25 = arith.constant 0 : index
      %c0_26 = arith.constant 0 : index
      %39 = vector.load %arg5[%c0_23, %c0_24, %c0_25, %c0_26] : memref<1x1x8x128xf32, #tpu.memory_space<vmem>>, vector<1x1x8x128xf32>
      tpu.vector_store %arg5[%c0_23, %c0_24, %c0_25, %c0_26], %38 {strides = array<i32>} : memref<1x1x8x128xf32, #tpu.memory_space<vmem>>, vector<1x1x8x128xf32>,
      %c0_27 = arith.constant 0 : index
      %c0_28 = arith.constant 0 : index
      %40 = vector.load %arg8[%c0_27, %c0_28] : memref<8x128xf32, #tpu.memory_space<vmem>>, vector<8x128xf32>
      %41 = vector.shape_cast %40 : vector<8x128xf32> to vector<1x8x128xf32>
      %cst_29 = arith.constant dense<0.000000e+00> : vector<1xf32>
      %42 = vector.multi_reduction <add>, %41, %cst_29 [1, 2] : vector<1x8x128xf32> to vector<1xf32>
      %43 = vector.shape_cast %42 : vector<1xf32> to vector<1x1x1xf32>
      %44 = vector.extract %43[0, 0, 0] : f32 from vector<1x1x1xf32>
      %45 = vector.broadcast %44 : f32 to vector<1x1x8x128xf32>
      %c0_30 = arith.constant 0 : index
      %c0_31 = arith.constant 0 : index
      %c0_32 = arith.constant 0 : index
      %c0_33 = arith.constant 0 : index
      %46 = vector.load %arg6[%c0_30, %c0_31, %c0_32, %c0_33] : memref<1x1x8x128xf32, #tpu.memory_space<vmem>>, vector<1x1x8x128xf32>
      tpu.vector_store %arg6[%c0_30, %c0_31, %c0_32, %c0_33], %45 {strides = array<i32>} : memref<1x1x8x128xf32, #tpu.memory_space<vmem>>, vector<1x1x8x128xf32>,
    } else {
    }
    return
  }
  func.func @transform_0(%arg0: i32, %arg1: i32, %arg2: i32) -> (i32, i32, i32) {
    %c1_i32 = arith.constant 1 : i32
    %0 = arith.muli %arg1, %c1_i32 : i32
    %1 = arith.addi %0, %arg2 : i32
    %c0_i32 = arith.constant 0 : i32
    %2 = arith.minsi %1, %c0_i32 : i32
    %c0_i32_0 = arith.constant 0 : i32
    %c0_i32_1 = arith.constant 0 : i32
    return %arg0, %2, %c0_i32_0 : i32, i32, i32
  }
  func.func @transform_1(%arg0: i32, %arg1: i32, %arg2: i32) -> (i32, i32, i32) {
    %c1_i32 = arith.constant 1 : i32
    %0 = arith.muli %arg1, %c1_i32 : i32
    %1 = arith.addi %0, %arg2 : i32
    %c0_i32 = arith.constant 0 : i32
    %2 = arith.minsi %1, %c0_i32 : i32
    %c0_i32_0 = arith.constant 0 : i32
    %c0_i32_1 = arith.constant 0 : i32
    return %arg0, %2, %c0_i32_0 : i32, i32, i32
  }
  func.func @transform_2(%arg0: i32, %arg1: i32, %arg2: i32) -> (i32, i32, i32, i32) {
    %c0_i32 = arith.constant 0 : i32
    %c0_i32_0 = arith.constant 0 : i32
    %c0_i32_1 = arith.constant 0 : i32
    return %arg0, %arg1, %c0_i32, %c0_i32_0 : i32, i32, i32, i32
  }
  func.func @transform_3(%arg0: i32, %arg1: i32, %arg2: i32) -> (i32, i32, i32, i32) {
    %c0_i32 = arith.constant 0 : i32
    %c0_i32_0 = arith.constant 0 : i32
    %c0_i32_1 = arith.constant 0 : i32
    return %arg0, %arg1, %c0_i32, %c0_i32_0 : i32, i32, i32, i32
  }
}

</mosaic_0001>

<bundles_post_ra>
// kernel: tpu_custom_call.1
= control target key start
LH: loop header
LB: loop body
LE: loop exit
PB: predicated region body
PF: predicated region fallthrough
CT: control target
= control target key end

     0   :  { %s1177_s0 = inlined_call_operand.hbm [shape: f32[2,8,128], index: 0, kind: input, shape index: {}]   ;;  %s1178_s1 = inlined_call_operand.hbm [shape: f32[2,8,128], index: 1, kind: input, shape index: {}]   ;;  %s1179_s2 = inlined_call_operand.hbm [shape: f32[2,2,8,128], index: 2, kind: output, shape index: {0}]   ;;  %s1180_s3 = inlined_call_operand.hbm [shape: f32[2,2,8,128], index: 3, kind: output, shape index: {1}]  }
   0x1   :  { %1187 = sst [smem:[#allocation20_spill]] %s1177_s0 }
   0x2   :  { %9 = vsyncpa [#allocation5], 0 }
   0x3   :  { %11 = vsyncpa [#allocation5 + $0x1], 0 }
   0x4   :  { %12 = vsyncpa [#allocation8], 0 }
   0x5   :  { %14 = vsyncpa [#allocation8 + $0x1], 0 }
   0x6   :  { %15 = vsyncpa [#allocation6], 0 }
   0x7   :  { %17 = vsyncpa [#allocation6 + $0x1], 0 }
   0x8   :  { %18 = vsyncpa [#allocation11], 0 }
   0x9   :  { %20 = vsyncpa [#allocation11 + $0x1], 0  ;;  %s896_s12 = smov 0   ;;  %s898_s13 = smov 0  }
   0xa   :  { %s900_s14 = smov 0   ;;  %s902_s15 = smov 0  }
   0xb   :  { %s904_s16 = smov 0   ;;  %s906_s17 = smov 0  }
   0xc   :  { %s908_s18 = smov 0   ;;  %s910_s19 = smov 0  }
   0xd   :  { %s912_s20 = smov 0   ;;  %s914_s21 = smov 0  }
   0xe   :  { %s916_s22 = smov 0  }
   0xf LB: > { %1188 = sst [smem:[#allocation16_spill]] %s862_s20  ;;  %s522_s23 = sadd.s32 4294967295, %s870_s22   ;;  %s870_s22 = sphi %s916_s22, %s26_s22   ;;  %s866_s21 = sphi %s914_s21, %s1216_s21   ;;  %s862_s20 = sphi %s912_s20, %s1207_s20   ;;  %s858_s19 = sphi %s910_s19, %s1215_s19   ;;  %s854_s18 = sphi %s908_s18, %s1206_s18   ;;  %s850_s17 = sphi %s906_s17, %s1214_s17   ;;  %s846_s16 = sphi %s904_s16, %s1213_s16   ;;  %s842_s15 = sphi %s902_s15, %s1212_s15   ;;  %s838_s14 = sphi %s900_s14, %s1211_s14   ;;  %s834_s13 = sphi %s898_s13, %s1210_s13   ;;  %s830_s12 = sphi %s896_s12, %s1209_s12  }
  0x10   : > { %s523_s24 = sadd.s32 4294967294, %s870_s22   ;;  %s41_s25 = sadd.s32 1, %s862_s20 }
  0x11   : > { %s45_s26 = sadd.s32 1, %s866_s21  ;;  %p43_p0 = scmp.ge.s32.totalorder %s41_s25, 2 }
  0x12   : > { %s60_s27 = sadd.s32 1, %s850_s17  ;;  %p67_p1 = scmp.ne.s32.totalorder %s850_s17, %s846_s16 }
  0x13   : > { %s1218_s25 = smov (%p43_p0, %s41_s25), 0  ;;  %s1220_s26 = smov (!%p43_p0, %s45_s26), %s866_s21 }
  0x14   : > { %1189 = sst [smem:[#allocation17_spill]] %s1218_s25  ;;  %p47_p2 = scmp.ge.s32.totalorder %s1220_s26, 2 }
  0x15   : > { %p68_p3 = scmp.eq.s32.totalorder %s870_s22, 0  ;;  %p73_p4 = scmp.ne.s32.totalorder %s846_s16, %s842_s15 }
  0x16   : > { %s1222_s26 = smov (%p47_p2, %s1220_s26), 0  ;;  %p74_p6 = scmp.eq.s32.totalorder %s522_s23, 0 }
  0x17   : > { %1190 = sst [smem:[#allocation18_spill]] %s1222_s26  ;;  %s55_s28 = ssub.s32 %s866_s21, %s1222_s26 }
  0x18   : > { %p965_p5 = por %p68_p3, %p67_p1  ;;  %s118_s30 = ssub.s32 %s862_s20, %s1218_s25 }
  0x19   : > { %p58_p7 = scmp.eq.s32.totalorder %s55_s28, 0  ;;  %p971_p8 = por %p74_p6, %p73_p4 }
  0x1a   : > { %s119_s5 = sor.u32 %s118_s30, %s55_s28  ;;  %s122_s6 = sadd.s32 1, %s838_s14 }
  0x1b   : > { %s977_s7 = scalar_select %p58_p7, %s850_s17, %s60_s27  }
  0x1c   : > { %p120_p9 = scmp.eq.s32.totalorder %s119_s5, 0  ;;  %p132_p10 = scmp.ne.s32.totalorder %s838_s14, %s834_s13 }
  0x1d   : > { %1193 = sst [smem:[#allocation19_spill]] %s977_s7  ;;  %p133_p11 = scmp.eq.s32.totalorder %s522_s23, 3 }
  0x1e   : > { %p138_p12 = scmp.ne.s32.totalorder %s834_s13, %s830_s12  ;;  %p139_p0 = scmp.eq.s32.totalorder %s523_s24, 3 }
  0x1f   : > { %s984_s8 = scalar_select %p120_p9, %s838_s14, %s122_s6  }
  0x20   : > { %p986_p13 = por %p133_p11, %p132_p10  ;;  %p570_p1 = scmp.lt.s32.totalorder %s870_s22, 4 }
  0x21   : > { %p991_p2 = por %p139_p0, %p138_p12  ;;  %s996_s11 = sand.u32 1, %s850_s17  }
  0x22   : > { %s1194_s9 = scalar_select %p986_p13, 1, 0 }
  0x23   : > { %s1195_s10 = scalar_select %p991_p2, 1, 0 }
  0x24   : > { %s1181_s15 = sshll.u32 %s996_s11, 3  ;;  %s1182_s23 = sshll.u32 %s866_s21, 7 }
  0x25   : > { %s191_s27 = scalar_lea.vmem [#allocation4], %s1181_s15  ;;  %s1196_s0 = sld [smem:[#allocation20_spill]] }
  0x26   : > { %s202_s28 = sshll.u32 %s191_s27, 4  ;;  %p1011_p3 = pnand %p570_p1, %p965_p5  ;;  %s203_s28 = int_to_ptr.vmem [resolvable:$true] %s202_s28 }
  0x27   : > { %s188_s15 = scalar_lea.sflag [#allocation5], %s996_s11 }
  0x28   : > { %p662_p9 = pneg %p1011_p3 }
  0x2b   : > { %s1007_s24 = scalar_lea.hbm %s1196_s0, %s1182_s23  ;;  %s665_s29 = scalar_lea.hbm %s1196_s0, 256 }
  0x2c   : > { %s660_s27 = scalar_lea.hbm %s1007_s24, 128 }
  0x2d   : > { %p661_p7 = scmp.ne.s32.totalorder %s1007_s24, %s660_s27  ;;  %p667_p5 = scmp.lt.s32.totalorder %s665_s29, %s660_s27 }
  0x2f   : > { %p663_p10 = pnand %p662_p9, %p661_p7 }
  0x31   : > { %p664_p11 = pneg %p663_p10 }
  0x33   : > { %p669_p12 = pnand %p667_p5, %p664_p11 }
  0x35   : > { %672 = shalt.err (!%p669_p12)
}
  0x36   : > { %s673_s23 = scalar_lea.vmem %s203_s28, 128  ;;  %s872_s26 = smov [#allocation4]  }
  0x37   : > { %p674_p0 = scmp.ne.s32.totalorder %s203_s28, %s673_s23  ;;  %s678_s25 = sshll.u32 %s872_s26, 4  ;;  %s679_s25 = int_to_ptr.vmem [resolvable:$false] %s678_s25 }
  0x38   : > { %s680_s20 = scalar_lea.vmem %s679_s25, 256  ;;  %p681_p7 = scmp.lt.s32.totalorder %s203_s28, %s679_s25 }
  0x39   : > { %p676_p1 = pnand %p674_p0, %p662_p9  ;;  %p682_p10 = scmp.lt.s32.totalorder %s680_s20, %s673_s23 }
  0x3b   : > { %p677_p4 = pneg %p676_p1  ;;  %p683_p6 = por %p682_p10, %p681_p7 }
  0x3d   : > { %p684_p2 = pnand %p683_p6, %p677_p4 }
  0x3f   : > { %687 = shalt.err (!%p684_p2)
}
  0x40   : > { %559 = dma.hbm_to_vmem [thread:$0]  (!%p1011_p3), %s1007_s24, 128, %s203_s28, %s188_s15  }
  0x41   : > { %p1198_p11 = scmp.lt.s32.totalorder %s870_s22, 5  ;;  %p1199_p5 = scmp.ge.s32.totalorder %s870_s22, 1 }
  0x42   : > { %s1201_s20 = sshll.u32 %s866_s21, 7  ;;  %s1202_s30 = sshll.u32 %s996_s11, 3 }
  0x43   : > { %p1038_p12 = pnand %p1199_p5, %p1198_p11  ;;  %s222_s27 = scalar_lea.hbm %s1178_s1, %s1201_s20 }
  0x44   : > { %s213_s5 = scalar_lea.vmem [#allocation7], %s1202_s30  ;;  %s210_s0 = scalar_lea.sflag [#allocation8], %s996_s11 }
  0x45   : > { %s224_s29 = sshll.u32 %s213_s5, 4  ;;  %s688_s7 = scalar_lea.hbm %s222_s27, 128  ;;  %s225_s29 = int_to_ptr.vmem [resolvable:$true] %s224_s29 }
  0x46   : > { %p689_p2 = scmp.ne.s32.totalorder %s222_s27, %s688_s7  ;;  %s693_s24 = scalar_lea.hbm %s1178_s1, 256 }
  0x47   : > { %p695_p0 = scmp.lt.s32.totalorder %s693_s24, %s688_s7 }
  0x48   : > { %p691_p4 = pnand %p689_p2, %p662_p9 }
  0x4a   : > { %p692_p6 = pneg %p691_p4 }
  0x4c   : > { %p697_p1 = pnand %p695_p0, %p692_p6 }
  0x4e   : > { %700 = shalt.err (!%p697_p1)
}
  0x4f   : > { %s701_s25 = scalar_lea.vmem %s225_s29, 128  ;;  %s873_s11 = smov [#allocation7]  }
  0x50   : > { %p702_p7 = scmp.ne.s32.totalorder %s225_s29, %s701_s25  ;;  %s706_s20 = sshll.u32 %s873_s11, 4  ;;  %s707_s20 = int_to_ptr.vmem [resolvable:$false] %s706_s20 }
  0x51   : > { %s708_s23 = scalar_lea.vmem %s707_s20, 256  ;;  %p709_p5 = scmp.lt.s32.totalorder %s225_s29, %s707_s20 }
  0x52   : > { %p704_p10 = pnand %p702_p7, %p662_p9  ;;  %p710_p2 = scmp.lt.s32.totalorder %s708_s23, %s701_s25 }
  0x54   : > { %p705_p11 = pneg %p704_p10  ;;  %p711_p4 = por %p710_p2, %p709_p5 }
  0x56   : > { %p712_p13 = pnand %p711_p4, %p705_p11 }
  0x58   : > { %715 = shalt.err (!%p712_p13)
}
  0x59   : > { %562 = dma.hbm_to_vmem [thread:$0]  (!%p1011_p3), %s222_s27, 128, %s225_s29, %s210_s0  }
  0x5a   : > { %233 = sbr.rel (%p1038_p12) target bundleno = 343 (0x157), region = 28  ;;  %s235_s7 = sand.u32 (!%p1038_p12), 1, %s846_s16  }
  0x5b   : > { %s531_s30 = sshll.u32 (!%p1038_p12), %s235_s7, 3  ;;  %s236_s5 = scalar_lea.sflag (!%p1038_p12), [#allocation5], %s235_s7 }
  0x5c   : > { %s239_s15 = scalar_lea.vmem (!%p1038_p12), [#allocation4], %s531_s30 }
  0x5f   : > { %813 = dma.done.wait (%p971_p8), %s236_s5, 128  }
  0x60   : > { %815 = vsyncadd (%p971_p8), %s236_s5, 4294967168  ;;  %s245_s28 = scalar_lea.sflag [#allocation8], %s235_s7  ;;  %s248_s24 = scalar_lea.vmem [#allocation7], %s531_s30 }
  0x61   : > { %817 = dma.done.wait (%p971_p8), %s245_s28, 128  }
  0x62   : > { %819 = vsyncadd (%p971_p8), %s245_s28, 4294967168  ;;  %s535_s0 = sshll.u32 %s854_s18, 3  ;;  %v298_v0 = vlaneseq  ;;  %v293_v3 = vld [vmem:[%s239_s15] sm:$0xff]  ;;  %v294_v4 = vld [vmem:[%s248_s24] sm:$0xff]  ;;  %s1074_s4 = sand.u32 1, %s834_s13  }
  0x63   : > { %s297_s6 = ssub.s32 8, %s535_s0  ;;  %s538_s26 = sshll.u32 %s858_s19, 1 }
  0x64   : > { %v299_v1 = vshrl.u32 %v298_v0, 7  ;;  %v300_v2 = vstv %s297_s6  ;;  %s533_s27 = sshll.u32 %s1074_s4, 3  ;;  %s1079_s29 = sadd.s32 %s854_s18, %s538_s26 }
  0x65   : > { %s539_s25 = sshll.u32 %s1079_s29, 7  ;;  %s273_s11 = scalar_lea.vmem [#allocation9], %s533_s27 }
  0x66   : > { %vm301_vm0 = vcmp.lt.s32.totalorder %v299_v1, %v300_v2  ;;  %s362_s20 = sshll.u32 %s273_s11, 4  ;;  %s1082_s23 = scalar_lea.vmem [#allocation10], %s533_s27  ;;  %s1092_s20 = int_to_ptr.vmem [resolvable:$true] %s362_s20 }
  0x67   : > { %v302_v5 = vsel %vm301_vm0, %v293_v3, 0.0  ;;  %v303_v6 = vsel %vm301_vm0, %v294_v4, 0.0  ;;  %s377_s7 = sshll.u32 %s1082_s23, 4  ;;  %s1090_s15 = scalar_lea.hbm %s1179_s2, %s539_s25  ;;  %s1094_s7 = int_to_ptr.vmem [resolvable:$true] %s377_s7 }
  0x68   : > { %v305_v7 = vmul.f32 %v303_v6, %v302_v5  ;;  %v310_v8 = vadd.f32 %v303_v6, %v302_v5  ;;  %s342_s18 = scalar_lea.sflag [#allocation6], %s1074_s4  ;;  %s716_s28 = scalar_lea.vmem %s1092_s20, 128 }
  0x69   : > { %p717_p8 = scmp.ne.s32.totalorder %s1092_s20, %s716_s28  ;;  %p1203_p13 = scmp.ne.s32.totalorder %s1194_s9, 0 }
  0x6a   : > { %318 = vadd.xlane.f32.xlu0 %v305_v7  ;;  %s874_s24 = smov [#allocation9]  }
  0x6b   : > { %p718_p3 = pnand %p717_p8, %p1203_p13  ;;  %s720_s0 = sshll.u32 %s874_s24, 4  ;;  %s721_s0 = int_to_ptr.vmem [resolvable:$false] %s720_s0 }
  0x6c   : > { %s722_s6 = scalar_lea.vmem %s721_s0, 256  ;;  %p723_p12 = scmp.lt.s32.totalorder %s1092_s20, %s721_s0 }
  0x6d   : > { %p719_p9 = pneg %p718_p3  ;;  %p724_p6 = scmp.lt.s32.totalorder %s722_s6, %s716_s28 }
  0x6e   : > { %330 = vadd.xlane.f32.xlu0 %v310_v8 }
  0x6f   : > { %p725_p0 = por %p724_p6, %p723_p12 }
  0x71   : > { %p726_p1 = pnand %p725_p0, %p719_p9 }
  0xf3   : > { %v319_v9 = vpop.xlane.xlu0 %318 }
  0xf4   : > { %v320_v10 = vrot.slane %v319_v9, 4 }
  0xf6   : > { %v321_v11 = vadd.f32 %v320_v10, %v319_v9 }
  0xf7   : > { %v331_v12 = vpop.xlane.xlu0 %330 }
  0xf8   : > { %v322_v13 = vrot.slane %v321_v11, 2  ;;  %v332_v14 = vrot.slane %v331_v12, 4 }
  0xfa   : > { %v333_v15 = vadd.f32 %v332_v14, %v331_v12  ;;  %v323_v16 = vadd.f32 %v322_v13, %v321_v11 }
  0xfc   : > { %v334_v17 = vrot.slane %v333_v15, 2  ;;  %v324_v18 = vrot.slane %v323_v16, 1 }
  0xfe   : > { %v335_v19 = vadd.f32 %v334_v17, %v333_v15  ;;  %v325_v20 = vadd.f32 %v324_v18, %v323_v16 }
 0x100   : > { %544 = vpush %v325_v20  ;;  %v336_v21 = vrot.slane %v335_v19, 1 }
 0x102   : > { %v337_v22 = vadd.f32 %v336_v21, %v335_v19 }
 0x104   : > { %546 = vpush %v337_v22 }
 0x131   : > { %s545_s19 = spop %544 }
 0x132   : > { %v327_v23 = vstv %s545_s19 }
 0x133   : > { %328 = vst [vmem:[%s273_s11] sm:$0xff] %v327_v23 }
 0x134   : > { %729 = shalt.err (!%p726_p1)
}
 0x135   : > { %s730_s26 = scalar_lea.hbm %s1090_s15, 128  ;;  %s734_s30 = scalar_lea.hbm %s1179_s2, 512 }
 0x136   : > { %p731_p7 = scmp.ne.s32.totalorder %s1090_s15, %s730_s26  ;;  %p735_p5 = scmp.lt.s32.totalorder %s1090_s15, %s1179_s2 }
 0x137   : > { %p736_p2 = scmp.lt.s32.totalorder %s734_s30, %s730_s26 }
 0x138   : > { %p732_p10 = pnand %p731_p7, %p1203_p13 }
 0x139   : > { %p737_p4 = por %p736_p2, %p735_p5 }
 0x13a   : > { %p733_p11 = pneg %p732_p10 }
 0x13c   : > { %p738_p8 = pnand %p737_p4, %p733_p11 }
 0x13e   : > { %741 = shalt.err (!%p738_p8)
}
 0x13f   : > { %552 = dma.vmem_to_hbm [thread:$0]  (%p1203_p13), %s1092_s20, 128, %s1090_s15, %s342_s18  }
 0x140   : > { %s547_s28 = spop %546  ;;  %s375_s6 = scalar_lea.hbm %s1180_s3, %s539_s25 }
 0x141   : > { %v339_v24 = vstv %s547_s28  ;;  %s347_s26 = scalar_lea.sflag [#allocation11], %s1074_s4  ;;  %s742_s27 = scalar_lea.vmem %s1094_s7, 128 }
 0x142   : > { %340 = vst [vmem:[%s1082_s23] sm:$0xff] %v339_v24  ;;  %p743_p3 = scmp.ne.s32.totalorder %s1094_s7, %s742_s27  ;;  %s875_s11 = smov [#allocation10]  }
 0x143   : > { %s746_s30 = sshll.u32 %s875_s11, 4  ;;  %s747_s30 = int_to_ptr.vmem [resolvable:$false] %s746_s30 }
 0x144   : > { %p744_p9 = pnand %p743_p3, %p1203_p13  ;;  %s748_s5 = scalar_lea.vmem %s747_s30, 256 }
 0x145   : > { %p749_p6 = scmp.lt.s32.totalorder %s1094_s7, %s747_s30  ;;  %p750_p0 = scmp.lt.s32.totalorder %s748_s5, %s742_s27 }
 0x146   : > { %p745_p12 = pneg %p744_p9 }
 0x147   : > { %p751_p1 = por %p750_p0, %p749_p6 }
 0x149   : > { %p752_p7 = pnand %p751_p1, %p745_p12 }
 0x14b   : > { %755 = shalt.err (!%p752_p7)
}
 0x14c   : > { %s756_s29 = scalar_lea.hbm %s375_s6, 128  ;;  %s760_s20 = scalar_lea.hbm %s1180_s3, 512 }
 0x14d   : > { %p757_p10 = scmp.ne.s32.totalorder %s375_s6, %s756_s29  ;;  %p761_p2 = scmp.lt.s32.totalorder %s375_s6, %s1180_s3 }
 0x14e   : > { %p762_p4 = scmp.lt.s32.totalorder %s760_s20, %s756_s29 }
 0x14f   : > { %p758_p11 = pnand %p757_p10, %p1203_p13 }
 0x150   : > { %p763_p8 = por %p762_p4, %p761_p2 }
 0x151   : > { %p759_p5 = pneg %p758_p11 }
 0x153   : > { %p764_p3 = pnand %p763_p8, %p759_p5 }
 0x155   : > { %767 = shalt.err (!%p764_p3)
}
 0x156   : > { %553 = dma.vmem_to_hbm [thread:$0]  (%p1203_p13), %s1094_s7, 128, %s375_s6, %s347_s26  }
 0x157 PF: > { %p571_p9 = scmp.ge.s32.totalorder %s870_s22, 2  ;;  %s389_s18 = sand.u32 1, %s830_s12  }
 0x158   : > { %p1204_p12 = scmp.ne.s32.totalorder %s1195_s10, 0  ;;  %s390_s19 = scalar_lea.sflag [#allocation6], %s389_s18 }
 0x15a   : > { %p564_p6 = pnand %p571_p9, %p1204_p12 }
 0x15c   : > { %p565_p0 = pneg %p564_p6 }
 0x15e   : > { %821 = dma.done.wait (%p565_p0), %s390_s19, 128  }
 0x15f   : > { %823 = vsyncadd (%p565_p0), %s390_s19, 4294967168  ;;  %s399_s28 = scalar_lea.sflag [#allocation11], %s389_s18 }
 0x160   : > { %825 = dma.done.wait (%p565_p0), %s399_s28, 128  }
 0x161   : > { %827 = vsyncadd (%p565_p0), %s399_s28, 4294967168  ;;  %s26_s22 = sadd.s32 1, %s870_s22   ;;  %s1205_s9 = sld [smem:[#allocation19_spill]] }
 0x162   : > { %p23_p1 = scmp.ge.s32.totalorder %s26_s22, 6   ;;  %s1206_s18 = sld [smem:[#allocation16_spill]] }
 0x163   : > { %s1207_s20 = sld [smem:[#allocation17_spill]]  ;;  %s1209_s12 = smov %s834_s13 }
 0x164   : > { %s1208_s10 = sld [smem:[#allocation18_spill]]  ;;  %s1210_s13 = smov %s838_s14 }
 0x165   : > { %s1211_s14 = smov %s984_s8  ;;  %s1212_s15 = smov %s846_s16 }
 0x166   : > { %s1213_s16 = smov %s850_s17  ;;  %s1215_s19 = smov %s866_s21 }
 0x167   : > { %s1214_s17 = smov %s1205_s9  ;;  %25 = sbr.rel (!%p23_p1) target bundleno = 15 (0xf), region = 111 }
 0x16a   : > { %s1216_s21 = smov %s1208_s10 }
 0x16c   :  { %404 = vsyncpa [#allocation5], 1 }
 0x16d   :  { %406 = vsyncpa [#allocation5 + $0x1], 1 }
 0x16e   :  { %407 = vsyncpa [#allocation8], 1 }
 0x16f   :  { %409 = vsyncpa [#allocation8 + $0x1], 1 }
 0x170   :  { %410 = vsyncpa [#allocation6], 1 }
 0x171   :  { %412 = vsyncpa [#allocation6 + $0x1], 1 }
 0x172   :  { %413 = vsyncpa [#allocation11], 1 }
 0x173   :  { %415 = vsyncpa [#allocation11 + $0x1], 1 }

</bundles_post_ra>
